<compile_context>
chip_gen: v7x
topology: tpu7x:2x2x1
jax: 0.10.0
libtpu: 0.0.40
codegen_flags: <defaults>
</compile_context>

<pallas_src>
import jax
import jax.numpy as jnp
from jax.experimental import pallas as pl
from jax.experimental.pallas import tpu as pltpu

LATENT_SIZE = 128
HIDDEN_SIZE = 256
IMAGE_SIZE = 28 * 28      # 784
IMAGE_SIZE_PAD = 896      # 7 * 128, lane-dense output width


def _round_up(x, m):
    return (x + m - 1) // m * m


def _generator_kernel(z_ref, w1_ref, b1_ref, w2_ref, b2_ref, w3_ref, b3_ref,
                      out_ref):
    # layer1 + ReLU  (bf16 matmul inputs, f32 accumulate, f32 epilogue)
    z = z_ref[...].astype(jnp.bfloat16)
    h = jnp.dot(z, w1_ref[...], preferred_element_type=jnp.float32)
    h = jnp.maximum(h + b1_ref[...], 0.0)
    # layer2 + ReLU
    h = jnp.dot(h.astype(jnp.bfloat16), w2_ref[...],
                preferred_element_type=jnp.float32)
    h = jnp.maximum(h + b2_ref[...], 0.0)
    # layer3 + Tanh
    h = jnp.dot(h.astype(jnp.bfloat16), w3_ref[...],
                preferred_element_type=jnp.float32)
    out_ref[...] = jnp.tanh(h + b3_ref[...]).astype(out_ref.dtype)


def generator_forward(latents, params, *, block_b=256):
    """latents: (B, LATENT_SIZE) f32 -> images: (B, IMAGE_SIZE) f32."""
    w1, b1, w2, b2, w3, b3 = params
    B = latents.shape[0]

    # Batch tile: multiple of 8 sublanes, capped at block_b (keeps per-step
    # VMEM small enough on v7x while still amortizing the weight DMA).
    tb = min(block_b, _round_up(B, 8))
    b_pad = _round_up(B, tb)
    if b_pad != B:
        latents = jnp.pad(latents, ((0, b_pad - B), (0, 0)))
    grid = (b_pad // tb,)

    def const_spec(shape):
        # Constant index_map -> block DMA'd once, resident across grid steps.
        return pl.BlockSpec(shape, lambda i, _s=shape: (0,) * len(_s))

    out = pl.pallas_call(
        _generator_kernel,
        out_shape=jax.ShapeDtypeStruct((b_pad, IMAGE_SIZE_PAD), jnp.float32),
        grid=grid,
        in_specs=[
            pl.BlockSpec((tb, LATENT_SIZE), lambda i: (i, 0)),   # latents (f32)
            const_spec((LATENT_SIZE, HIDDEN_SIZE)),              # w1 (bf16)
            const_spec((1, HIDDEN_SIZE)),                        # b1 (f32)
            const_spec((HIDDEN_SIZE, HIDDEN_SIZE)),              # w2 (bf16)
            const_spec((1, HIDDEN_SIZE)),                        # b2 (f32)
            const_spec((HIDDEN_SIZE, IMAGE_SIZE_PAD)),           # w3 (bf16, padded)
            const_spec((1, IMAGE_SIZE_PAD)),                     # b3 (f32, padded)
        ],
        out_specs=pl.BlockSpec((tb, IMAGE_SIZE_PAD), lambda i: (i, 0)),
        compiler_params=pltpu.CompilerParams(
            dimension_semantics=("parallel",),   # shard batch tiles across TCs
        ),
    )(latents, w1, b1, w2, b2, w3, b3)

    # Strip batch padding and output-lane padding (896 -> 784).
    return out[:B, :IMAGE_SIZE]


def init_params(key):
    """Deterministic init mimicking PyTorch nn.Linear default (uniform).

    Weights are stored (in, out) in bf16 (kernel computes x @ W + b, identical
    math to PyTorch's x @ W.T + b); biases stay f32.  w3/b3 are zero-padded to
    IMAGE_SIZE_PAD columns.
    """
    def linear(key, fan_in, fan_out, pad_out=None):
        kw, kb = jax.random.split(key)
        bound = 1.0 / (fan_in ** 0.5)
        w = jax.random.uniform(kw, (fan_in, fan_out), jnp.float32, -bound, bound)
        b = jax.random.uniform(kb, (1, fan_out), jnp.float32, -bound, bound)
        if pad_out is not None and pad_out > fan_out:
            w = jnp.pad(w, ((0, 0), (0, pad_out - fan_out)))
            b = jnp.pad(b, ((0, 0), (0, pad_out - fan_out)))
        return w.astype(jnp.bfloat16), b

    k1, k2, k3 = jax.random.split(key, 3)
    w1, b1 = linear(k1, LATENT_SIZE, HIDDEN_SIZE)
    w2, b2 = linear(k2, HIDDEN_SIZE, HIDDEN_SIZE)
    w3, b3 = linear(k3, HIDDEN_SIZE, IMAGE_SIZE, pad_out=IMAGE_SIZE_PAD)
    return (w1, b1, w2, b2, w3, b3)


def reference_forward(latents, params):
    """Plain-JAX f32 reference matching PyTorch semantics (bf16 weights upcast)."""
    w1, b1, w2, b2, w3, b3 = params
    w1 = w1.astype(jnp.float32)
    w2 = w2.astype(jnp.float32)
    w3 = w3.astype(jnp.float32)[:, :IMAGE_SIZE]
    b3 = b3[:, :IMAGE_SIZE]
    x = jnp.maximum(latents @ w1 + b1, 0.0)
    x = jnp.maximum(x @ w2 + b2, 0.0)
    return jnp.tanh(x @ w3 + b3)


if __name__ == "__main__":
    key = jax.random.PRNGKey(0)
    k_params, k_latents = jax.random.split(key)

    params = init_params(k_params)
    batch = 32
    latents = jax.random.normal(k_latents, (batch, LATENT_SIZE), jnp.float32)

    # block_b=8 -> 4 grid steps: exercises the resident-weight batch grid
    # (production use would leave block_b at its larger default).
    images = generator_forward(latents, params, block_b=8)
    images = jax.block_until_ready(images)

    ref = reference_forward(latents, params)
    assert images.shape == (batch, IMAGE_SIZE), images.shape
    max_err = float(jnp.max(jnp.abs(images - ref)))
    assert jnp.allclose(images, ref, atol=3e-2, rtol=3e-2), (
        f"mismatch vs reference, max abs err = {max_err}")

    print("KERNEL_OK")
</pallas_src>

<mosaic_0001>
module attributes {stable_mosaic.version = 11 : i64} {
  func.func @_generator_kernel(%arg0: i32, %arg1: memref<8x128xf32, #tpu.memory_space<vmem>>, %arg2: memref<128x256xbf16, #tpu.memory_space<vmem>>, %arg3: memref<1x256xf32, #tpu.memory_space<vmem>>, %arg4: memref<256x256xbf16, #tpu.memory_space<vmem>>, %arg5: memref<1x256xf32, #tpu.memory_space<vmem>>, %arg6: memref<256x896xbf16, #tpu.memory_space<vmem>>, %arg7: memref<1x896xf32, #tpu.memory_space<vmem>>, %arg8: memref<8x896xf32, #tpu.memory_space<vmem>>) attributes {dimension_semantics = [#tpu.dimension_semantics<parallel>], iteration_bounds = array<i64: 4>, scalar_prefetch = 0 : i64, scratch_operands = 0 : i64, tpu.core_type = #tpu.core_type<tc>, window_params = [{transform_indices = @transform_0, window_bounds = array<i64: 8, 128>}, {pipeline_mode = #tpu.pipeline_mode<synchronous>, transform_indices = @transform_1, window_bounds = array<i64: 128, 256>}, {pipeline_mode = #tpu.pipeline_mode<synchronous>, transform_indices = @transform_2, window_bounds = array<i64: 1, 256>}, {pipeline_mode = #tpu.pipeline_mode<synchronous>, transform_indices = @transform_3, window_bounds = array<i64: 256, 256>}, {pipeline_mode = #tpu.pipeline_mode<synchronous>, transform_indices = @transform_4, window_bounds = array<i64: 1, 256>}, {pipeline_mode = #tpu.pipeline_mode<synchronous>, transform_indices = @transform_5, window_bounds = array<i64: 256, 896>}, {pipeline_mode = #tpu.pipeline_mode<synchronous>, transform_indices = @transform_6, window_bounds = array<i64: 1, 896>}, {transform_indices = @transform_7, window_bounds = array<i64: 8, 896>}]} {
    %c0 = arith.constant 0 : index
    %c0_0 = arith.constant 0 : index
    %0 = vector.load %arg1[%c0, %c0_0] : memref<8x128xf32, #tpu.memory_space<vmem>>, vector<8x128xf32>
    %1 = arith.truncf %0 : vector<8x128xf32> to vector<8x128xbf16>
    %c0_1 = arith.constant 0 : index
    %c0_2 = arith.constant 0 : index
    %2 = vector.load %arg2[%c0_1, %c0_2] : memref<128x256xbf16, #tpu.memory_space<vmem>>, vector<128x256xbf16>
    %cst = arith.constant dense<0.000000e+00> : vector<8x256xf32>
    %3 = tpu.matmul %1, %2, %cst {dimension_numbers = #tpu.dot_dimension_numbers<[1], [0], [0], [1], [0, 0, 1, 1], [], []>} : vector<8x128xbf16>, vector<128x256xbf16>, vector<8x256xf32> -> vector<8x256xf32>
    %c0_3 = arith.constant 0 : index
    %c0_4 = arith.constant 0 : index
    %4 = vector.load %arg3[%c0_3, %c0_4] : memref<1x256xf32, #tpu.memory_space<vmem>>, vector<1x256xf32>
    %5 = vector.broadcast %4 : vector<1x256xf32> to vector<8x256xf32>
    %6 = arith.addf %3, %5 : vector<8x256xf32>
    %cst_5 = arith.constant 0.000000e+00 : f32
    %7 = vector.broadcast %cst_5 : f32 to vector<8x256xf32>
    %8 = arith.maximumf %6, %7 : vector<8x256xf32>
    %9 = arith.truncf %8 : vector<8x256xf32> to vector<8x256xbf16>
    %c0_6 = arith.constant 0 : index
    %c0_7 = arith.constant 0 : index
    %10 = vector.load %arg4[%c0_6, %c0_7] : memref<256x256xbf16, #tpu.memory_space<vmem>>, vector<256x256xbf16>
    %cst_8 = arith.constant dense<0.000000e+00> : vector<8x256xf32>
    %11 = tpu.matmul %9, %10, %cst_8 {dimension_numbers = #tpu.dot_dimension_numbers<[1], [0], [0], [1], [0, 0, 1, 1], [], []>} : vector<8x256xbf16>, vector<256x256xbf16>, vector<8x256xf32> -> vector<8x256xf32>
    %c0_9 = arith.constant 0 : index
    %c0_10 = arith.constant 0 : index
    %12 = vector.load %arg5[%c0_9, %c0_10] : memref<1x256xf32, #tpu.memory_space<vmem>>, vector<1x256xf32>
    %13 = vector.broadcast %12 : vector<1x256xf32> to vector<8x256xf32>
    %14 = arith.addf %11, %13 : vector<8x256xf32>
    %cst_11 = arith.constant 0.000000e+00 : f32
    %15 = vector.broadcast %cst_11 : f32 to vector<8x256xf32>
    %16 = arith.maximumf %14, %15 : vector<8x256xf32>
    %17 = arith.truncf %16 : vector<8x256xf32> to vector<8x256xbf16>
    %c0_12 = arith.constant 0 : index
    %c0_13 = arith.constant 0 : index
    %18 = vector.load %arg6[%c0_12, %c0_13] : memref<256x896xbf16, #tpu.memory_space<vmem>>, vector<256x896xbf16>
    %cst_14 = arith.constant dense<0.000000e+00> : vector<8x896xf32>
    %19 = tpu.matmul %17, %18, %cst_14 {dimension_numbers = #tpu.dot_dimension_numbers<[1], [0], [0], [1], [0, 0, 1, 1], [], []>} : vector<8x256xbf16>, vector<256x896xbf16>, vector<8x896xf32> -> vector<8x896xf32>
    %c0_15 = arith.constant 0 : index
    %c0_16 = arith.constant 0 : index
    %20 = vector.load %arg7[%c0_15, %c0_16] : memref<1x896xf32, #tpu.memory_space<vmem>>, vector<1x896xf32>
    %21 = vector.broadcast %20 : vector<1x896xf32> to vector<8x896xf32>
    %22 = arith.addf %19, %21 : vector<8x896xf32>
    %23 = math.tanh %22 : vector<8x896xf32>
    %c0_17 = arith.constant 0 : index
    %c0_18 = arith.constant 0 : index
    %24 = vector.load %arg8[%c0_17, %c0_18] : memref<8x896xf32, #tpu.memory_space<vmem>>, vector<8x896xf32>
    tpu.vector_store %arg8[%c0_17, %c0_18], %23 {strides = array<i32>} : memref<8x896xf32, #tpu.memory_space<vmem>>, vector<8x896xf32>,
    return
  }
  func.func @transform_0(%arg0: i32) -> (i32, i32) {
    %c0_i32 = arith.constant 0 : i32
    %c0_i32_0 = arith.constant 0 : i32
    return %arg0, %c0_i32 : i32, i32
  }
  func.func @transform_1(%arg0: i32) -> (i32, i32) {
    %c0_i32 = arith.constant 0 : i32
    %c0_i32_0 = arith.constant 0 : i32
    %c0_i32_1 = arith.constant 0 : i32
    return %c0_i32, %c0_i32_0 : i32, i32
  }
  func.func @transform_2(%arg0: i32) -> (i32, i32) {
    %c0_i32 = arith.constant 0 : i32
    %c0_i32_0 = arith.constant 0 : i32
    %c0_i32_1 = arith.constant 0 : i32
    return %c0_i32, %c0_i32_0 : i32, i32
  }
  func.func @transform_3(%arg0: i32) -> (i32, i32) {
    %c0_i32 = arith.constant 0 : i32
    %c0_i32_0 = arith.constant 0 : i32
    %c0_i32_1 = arith.constant 0 : i32
    return %c0_i32, %c0_i32_0 : i32, i32
  }
  func.func @transform_4(%arg0: i32) -> (i32, i32) {
    %c0_i32 = arith.constant 0 : i32
    %c0_i32_0 = arith.constant 0 : i32
    %c0_i32_1 = arith.constant 0 : i32
    return %c0_i32, %c0_i32_0 : i32, i32
  }
  func.func @transform_5(%arg0: i32) -> (i32, i32) {
    %c0_i32 = arith.constant 0 : i32
    %c0_i32_0 = arith.constant 0 : i32
    %c0_i32_1 = arith.constant 0 : i32
    return %c0_i32, %c0_i32_0 : i32, i32
  }
  func.func @transform_6(%arg0: i32) -> (i32, i32) {
    %c0_i32 = arith.constant 0 : i32
    %c0_i32_0 = arith.constant 0 : i32
    %c0_i32_1 = arith.constant 0 : i32
    return %c0_i32, %c0_i32_0 : i32, i32
  }
  func.func @transform_7(%arg0: i32) -> (i32, i32) {
    %c0_i32 = arith.constant 0 : i32
    %c0_i32_0 = arith.constant 0 : i32
    return %arg0, %c0_i32 : i32, i32
  }
}

</mosaic_0001>

<bundles_post_ra>
// kernel: tpu_custom_call.1
= control target key start
LH: loop header
LB: loop body
LE: loop exit
PB: predicated region body
PF: predicated region fallthrough
CT: control target
= control target key end

     0   :  { %12 = vsyncpa [#allocation3], 0  ;;  %s2843_s0 = inlined_call_operand.hbm [shape: f32[32,128], index: 0, kind: input, shape index: {}]   ;;  %s2844_s1 = inlined_call_operand.hbm [shape: bf16[128,256], index: 1, kind: input, shape index: {}]   ;;  %s2845_s2 = inlined_call_operand.vmem [shape: f32[1,256], index: 2, kind: input, shape index: {}]   ;;  %s2846_s3 = inlined_call_operand.hbm [shape: bf16[256,256], index: 3, kind: input, shape index: {}]   ;;  %s2847_s4 = inlined_call_operand.vmem [shape: f32[1,256], index: 4, kind: input, shape index: {}]   ;;  %s2848_s5 = inlined_call_operand.hbm [shape: bf16[256,896], index: 5, kind: input, shape index: {}]   ;;  %s2849_s6 = inlined_call_operand.vmem [shape: f32[1,896], index: 6, kind: input, shape index: {}]   ;;  %s2850_s7 = inlined_call_operand.hbm [shape: f32[32,896], index: 7, kind: output, shape index: {}]  }
   0x1   :  { %14 = vsyncpa [#allocation3 + $0x1], 0 }
   0x2   :  { %15 = vsyncpa [#allocation6], 0 }
   0x3   :  { %16 = vsyncpa [#allocation9], 0 }
   0x4   :  { %17 = vsyncpa [#allocation4], 0 }
   0x5   :  { %19 = vsyncpa [#allocation4 + $0x1], 0  ;;  %s2543_s24 = smov 0   ;;  %s2545_s25 = smov 0  }
   0x6   :  { %s2547_s26 = smov 0   ;;  %s2549_s27 = smov 0  }
   0x7 LB: > { %s2564_s28 = sadd.s32 4294967295, %s2491_s27   ;;  %s1775_s29 = sadd.s32 4294967294, %s2491_s27   ;;  %s2491_s27 = sphi %s2549_s27, %s2875_s27   ;;  %s2487_s26 = sphi %s2547_s26, %s2874_s26   ;;  %s2483_s25 = sphi %s2545_s25, %s2873_s25   ;;  %s2479_s24 = sphi %s2543_s24, %s2872_s24  }
   0x8   : > { %p45_p0 = scmp.ne.s32.totalorder %s2483_s25, %s2479_s24  ;;  %p2851_p1 = scmp.eq.s32.totalorder %s2564_s28, 0 }
   0x9   : > { %p201_p3 = scmp.eq.s32.totalorder %s1775_s29, 3  ;;  %p1776_p5 = scmp.ge.s32.totalorder %s2491_s27, 1 }
   0xa   : > { %p2573_p4 = por %p2851_p1, %p45_p0  ;;  %p208_p7 = scmp.lt.s32.totalorder %s2491_s27, 5 }
   0xb   : > { %p2578_p6 = por %p201_p3, %p45_p0  ;;  %s2493_s10 = smov [#allocation5]  }
   0xc   : > { %s2855_s30 = scalar_select %p2573_p4, 1, 0 }
   0xd   : > { %s2856_s8 = scalar_select %p2578_p6, 1, 0 }
   0xe   : > { %p2583_p8 = pnand %p1776_p5, %p208_p7  ;;  %s220_s11 = sshll.u32 %s2493_s10, 4  ;;  %s2587_s11 = int_to_ptr.vmem [resolvable:$true] %s220_s11 }
   0xf   : > { %2857 = sst [smem:[#allocation15_spill]] %s2856_s8  ;;  %s2494_s13 = smov [#allocation7]  }
  0x10   : > { %s2858_s9 = scalar_select %p2583_p8, 1, 0 }
  0x11   : > { %p1991_p9 = pneg %p2583_p8  ;;  %s236_s14 = sshll.u32 %s2494_s13, 4  ;;  %s2597_s14 = int_to_ptr.vmem [resolvable:$true] %s236_s14 }
  0x12   : > { %s2495_s15 = smov [#allocation8]   ;;  %s2303_s19 = scalar_lea.hbm %s2844_s1, 2048 }
  0x13   : > { %p2593_p10 = pnand %p1991_p9, %p2851_p1  ;;  %s2599_s16 = sshll.u32 %s2495_s15, 4  ;;  %s253_s16 = int_to_ptr.vmem [resolvable:$true] %s2599_s16 }
  0x14   : > { %p2304_p11 = scmp.ne.s32.totalorder %s2844_s1, %s2303_s19  ;;  %p2310_p3 = scmp.lt.u32.totalorder %s2303_s19, %s2844_s1 }
  0x15   : > { %p2609_p12 = pneg %p2593_p10 }
  0x17   : > { %p2306_p13 = pnand %p2609_p12, %p2304_p11 }
  0x19   : > { %p2307_p0 = pneg %p2306_p13 }
  0x1b   : > { %p2312_p5 = pnand %p2310_p3, %p2307_p0 }
  0x1d   : > { %2315 = shalt.err (!%p2312_p5)
}
  0x1e   : > { %s2316_s10 = scalar_lea.vmem %s2587_s11, 2048  ;;  %p2324_p2 = scmp.lt.s32.totalorder %s2587_s11, %s2587_s11 }
  0x1f   : > { %p2317_p7 = scmp.ne.s32.totalorder %s2587_s11, %s2316_s10  ;;  %p2325_p6 = scmp.lt.s32.totalorder %s2316_s10, %s2316_s10 }
  0x21   : > { %p2319_p9 = pnand %p2317_p7, %p2609_p12  ;;  %p2326_p11 = por %p2325_p6, %p2324_p2 }
  0x23   : > { %p2320_p1 = pneg %p2319_p9 }
  0x25   : > { %p2327_p13 = pnand %p2326_p11, %p2320_p1 }
  0x27   : > { %2330 = shalt.err (!%p2327_p13)
}
  0x28   : > { %s2496_s13 = smov 128   ;;  %s2497_s15 = smov 8  }
  0x29   : > { %1994 = dma.hbm_to_vmem [thread:$0]  (!%p2593_p10), %s2844_s1, 2048, %s2587_s11, [#allocation6], %s2496_s13, %s2496_s13, %s2497_s15  }
  0x2a   : > { %s2331_s21 = scalar_lea.hbm %s2846_s3, 4096 }
  0x2b   : > { %p2332_p2 = scmp.ne.s32.totalorder %s2846_s3, %s2331_s21  ;;  %p2338_p0 = scmp.lt.u32.totalorder %s2331_s21, %s2846_s3 }
  0x2d   : > { %p2334_p1 = pnand %p2332_p2, %p2609_p12 }
  0x2f   : > { %p2335_p6 = pneg %p2334_p1 }
  0x31   : > { %p2340_p3 = pnand %p2338_p0, %p2335_p6 }
  0x33   : > { %2343 = shalt.err (!%p2340_p3)
}
  0x34   : > { %s2344_s11 = scalar_lea.vmem %s2597_s14, 4096  ;;  %p2352_p11 = scmp.lt.s32.totalorder %s2597_s14, %s2597_s14 }
  0x35   : > { %p2345_p5 = scmp.ne.s32.totalorder %s2597_s14, %s2344_s11  ;;  %p2353_p13 = scmp.lt.s32.totalorder %s2344_s11, %s2344_s11 }
  0x37   : > { %p2347_p7 = pnand %p2345_p5, %p2609_p12  ;;  %p2354_p2 = por %p2353_p13, %p2352_p11 }
  0x39   : > { %p2348_p9 = pneg %p2347_p7 }
  0x3b   : > { %p2355_p1 = pnand %p2354_p2, %p2348_p9 }
  0x3d   : > { %2358 = shalt.err (!%p2355_p1)
}
  0x3e   : > { %1997 = dma.hbm_to_vmem [thread:$0]  (!%p2593_p10), %s2846_s3, 4096, %s2597_s14, [#allocation6], %s2496_s13, %s2496_s13, %s2497_s15  }
  0x3f   : > { %s2359_s20 = scalar_lea.hbm %s2848_s5, 14336 }
  0x40   : > { %p2360_p6 = scmp.ne.s32.totalorder %s2848_s5, %s2359_s20  ;;  %p2366_p5 = scmp.lt.u32.totalorder %s2359_s20, %s2848_s5 }
  0x42   : > { %p2362_p0 = pnand %p2360_p6, %p2609_p12 }
  0x44   : > { %p2363_p3 = pneg %p2362_p0 }
  0x46   : > { %p2368_p7 = pnand %p2366_p5, %p2363_p3 }
  0x48   : > { %2371 = shalt.err (!%p2368_p7)
}
  0x49   : > { %s2372_s11 = scalar_lea.vmem %s253_s16, 14336  ;;  %p2380_p2 = scmp.lt.s32.totalorder %s253_s16, %s253_s16 }
  0x4a   : > { %p2373_p9 = scmp.ne.s32.totalorder %s253_s16, %s2372_s11  ;;  %p2381_p1 = scmp.lt.s32.totalorder %s2372_s11, %s2372_s11 }
  0x4c   : > { %p2375_p11 = pnand %p2373_p9, %p2609_p12  ;;  %p2382_p4 = por %p2381_p1, %p2380_p2 }
  0x4e   : > { %p2376_p13 = pneg %p2375_p11 }
  0x50   : > { %p2383_p8 = pnand %p2382_p4, %p2376_p13 }
  0x52   : > { %2386 = shalt.err (!%p2383_p8)
}
  0x53   : > { %s2498_s14 = smov 448   ;;  %s2499_s22 = smov 28  }
  0x54   : > { %2000 = dma.hbm_to_vmem [thread:$0]  (!%p2593_p10), %s2848_s5, 14336, %s253_s16, [#allocation9], %s2498_s14, %s2498_s14, %s2499_s22  }
  0x55   : > { %s2673_s8 = sadd.s32 1, %s2491_s27   ;;  %s32_s18 = sadd.s32 1, %s2487_s26 }
  0x56   : > { %s29_s17 = ssub.s32 %s2491_s27, %s2673_s8  ;;  %p39_p8 = scmp.ne.s32.totalorder %s2487_s26, %s2483_s25 }
  0x57   : > { %p30_p4 = scmp.eq.s32.totalorder %s29_s17, 0  ;;  %p40_p12 = scmp.eq.s32.totalorder %s2491_s27, 0 }
  0x58   : > { %p2012_p6 = scmp.lt.s32.totalorder %s2491_s27, 4  ;;  %p2861_p3 = scmp.eq.s32.totalorder %s2564_s28, 3 }
  0x59   : > { %s2683_s19 = scalar_select %p30_p4, %s2487_s26, %s32_s18  }
  0x5a   : > { %p41_p0 = por %p40_p12, %p39_p8  ;;  %p2687_p5 = por %p2861_p3, %p39_p8 }
  0x5b   : > { %s269_s12 = sand.u32 1, %s2487_s26   ;;  %s1782_s21 = sshll.u32 %s2491_s27, 7 }
  0x5c   : > { %s1781_s16 = sshll.u32 %s269_s12, 3  ;;  %s2696_s10 = scalar_lea.hbm %s2843_s0, %s1782_s21 }
  0x5d   : > { %s273_s11 = scalar_lea.vmem [#allocation2], %s1781_s16  ;;  %p2698_p10 = pnand %p2012_p6, %p41_p0 }
  0x5e   : > { %s280_s14 = sshll.u32 %s273_s11, 4  ;;  %s270_s13 = scalar_lea.sflag [#allocation3], %s269_s12  ;;  %s2702_s14 = int_to_ptr.vmem [resolvable:$true] %s280_s14 }
  0x5f   : > { %s2387_s15 = scalar_lea.hbm %s2696_s10, 128  ;;  %p2389_p9 = pneg %p2698_p10 }
  0x60   : > { %p2388_p7 = scmp.ne.s32.totalorder %s2696_s10, %s2387_s15  ;;  %s2392_s21 = scalar_lea.hbm %s2843_s0, 512 }
  0x61   : > { %p2393_p2 = scmp.lt.u32.totalorder %s2696_s10, %s2843_s0  ;;  %p2394_p1 = scmp.lt.u32.totalorder %s2392_s21, %s2387_s15 }
  0x62   : > { %p2390_p11 = pnand %p2389_p9, %p2388_p7  ;;  %p2396_p8 = scmp.lt.u32.totalorder %s2387_s15, %s2696_s10 }
  0x63   : > { %p2395_p4 = por %p2394_p1, %p2393_p2 }
  0x64   : > { %p2391_p13 = pneg %p2390_p11 }
  0x65   : > { %p2397_p12 = por %p2396_p8, %p2395_p4 }
  0x67   : > { %p2398_p6 = pnand %p2397_p12, %p2391_p13 }
  0x69   : > { %2401 = shalt.err (!%p2398_p6)
}
  0x6a   : > { %s2402_s12 = scalar_lea.vmem %s2702_s14, 128  ;;  %s2500_s29 = smov [#allocation2]  }
  0x6b   : > { %p2403_p0 = scmp.ne.s32.totalorder %s2702_s14, %s2402_s12  ;;  %s2407_s11 = sshll.u32 %s2500_s29, 4  ;;  %s2408_s11 = int_to_ptr.vmem [resolvable:$false] %s2407_s11 }
  0x6c   : > { %s2409_s17 = scalar_lea.vmem %s2408_s11, 256  ;;  %p2410_p11 = scmp.lt.s32.totalorder %s2702_s14, %s2408_s11 }
  0x6d   : > { %p2405_p3 = pnand %p2403_p0, %p2389_p9  ;;  %p2411_p2 = scmp.lt.s32.totalorder %s2409_s17, %s2402_s12 }
  0x6f   : > { %p2406_p7 = pneg %p2405_p3  ;;  %p2412_p1 = por %p2411_p2, %p2410_p11 }
  0x71   : > { %p2413_p4 = pnand %p2412_p1, %p2406_p7 }
  0x73   : > { %2416 = shalt.err (!%p2413_p4)
}
  0x74   : > { %2004 = dma.hbm_to_vmem [thread:$0]  (!%p2698_p10), %s2696_s10, 128, %s2702_s14, %s270_s13  }
  0x75   : > { %p2864_p13 = scmp.ne.s32.totalorder %s2858_s9, 0 }
  0x76   : > { %s2732_s15 = sand.u32 (!%p2864_p13), 1, %s2483_s25   ;;  %p2865_p9 = scmp.ne.s32.totalorder (!%p2864_p13), %s2855_s30, 0 }
  0x77   : > { %289 = sbr.rel (%p2864_p13) target bundleno = 911 (0x38f), region = 48  ;;  %s1784_s18 = sshll.u32 (!%p2864_p13), %s2732_s15, 3 }
  0x78   : > { %s292_s21 = scalar_lea.sflag (!%p2864_p13), [#allocation3], %s2732_s15  ;;  %s2736_s16 = scalar_lea.vmem (!%p2864_p13), [#allocation2], %s1784_s18 }
  0x7e   : > { %2462 = dma.done.wait (%p2865_p9), %s292_s21, 128  }
  0x7f   : > { %2464 = vsyncadd (%p2865_p9), %s292_s21, 4294967168  ;;  %p2866_p10 = scmp.eq.s32.totalorder %s2564_s28, 0 }
  0x81   : > { %2466 = dma.done.wait (%p2866_p10), [#allocation6], 6144   ;;  %p2867_p8 = pmov %p2866_p10 }
  0x83   : > { %2468 = vsyncadd (%p2867_p8), [#allocation6], 4294961152  ;;  %p2868_p12 = pmov %p2867_p8 }
  0x84   : > { %p2869_p6 = pmov %p2867_p8 }
  0x85   : > { %2470 = dma.done.wait (%p2868_p12), [#allocation9], 14336  }
  0x86   : > { %2472 = vsyncadd (%p2869_p6), [#allocation9], 4294952960  ;;  %v2501_v0 = vmov 0   ;;  %v2057_v1 = vld [vmem:[#allocation5 + $0x4] ss:$8 sps:$4 sm:$0xff]   ;;  %v339_v26 = vld [vmem:[%s2736_s16] sm:$0xff] }
  0x87   : > { %481 = vmatprep.mubr.bf16.mxu0 %v2501_v0  ;;  %v2059_v2 = vld [vmem:[#allocation5] ss:$8 sps:$4 sm:$0xff]   ;;  %449 = vmatprep.subr.bf16.mxu0 %v2057_v1  ;;  %v2060_v3 = vld [vmem:[#allocation5 + $0x14] ss:$8 sps:$4 sm:$0xff]   ;;  %v2062_v4 = vld [vmem:[#allocation5 + $0x10] ss:$8 sps:$4 sm:$0xff]   ;;  %v340_v31 = vpack.c.bf16 %v339_v26, %v339_v26 }
  0x88   : > { %450 = vmatpush1.bf16.msra.mxu0 %v2059_v2  ;;  %v2063_v5 = vld [vmem:[#allocation5 + $0x24] ss:$8 sps:$4 sm:$0xff]   ;;  %v2065_v6 = vld [vmem:[#allocation5 + $0x20] ss:$8 sps:$4 sm:$0xff]   ;;  %v2066_v7 = vld [vmem:[#allocation5 + $0x34] ss:$8 sps:$4 sm:$0xff]  }
  0x89   : > { %451 = vmatprep.subr.bf16.mxu0 %v2060_v3  ;;  %v2068_v8 = vld [vmem:[#allocation5 + $0x30] ss:$8 sps:$4 sm:$0xff]   ;;  %v2069_v9 = vld [vmem:[#allocation5 + $0x44] ss:$8 sps:$4 sm:$0xff]   ;;  %v2083_v11 = vld [vmem:[#allocation7] ss:$8 sps:$4 sm:$0xff]  }
  0x8a   : > { %v2081_v10 = vld [vmem:[#allocation7 + $0x4] ss:$8 sps:$4 sm:$0xff]   ;;  %v2084_v12 = vld [vmem:[#allocation7 + $0x14] ss:$8 sps:$4 sm:$0xff]   ;;  %v2071_v13 = vld [vmem:[#allocation5 + $0x40] ss:$8 sps:$4 sm:$0xff]  }
  0x8b   : > { %698 = vmatprep.subr.bf16.mxu1 %v2081_v10  ;;  %v2086_v14 = vld [vmem:[#allocation7 + $0x10] ss:$8 sps:$4 sm:$0xff]   ;;  %v2087_v15 = vld [vmem:[#allocation7 + $0x24] ss:$8 sps:$4 sm:$0xff]   ;;  %v2072_v16 = vld [vmem:[#allocation5 + $0x54] ss:$8 sps:$4 sm:$0xff]  }
  0x8c   : > { %452 = vmatpush1.bf16.msra.mxu0 %v2062_v4  ;;  %699 = vmatpush1.bf16.msra.mxu1 %v2083_v11  ;;  %v2074_v17 = vld [vmem:[#allocation5 + $0x50] ss:$8 sps:$4 sm:$0xff]   ;;  %v2089_v18 = vld [vmem:[#allocation7 + $0x20] ss:$8 sps:$4 sm:$0xff]   ;;  %v2090_v19 = vld [vmem:[#allocation7 + $0x34] ss:$8 sps:$4 sm:$0xff]  }
  0x8d   : > { %453 = vmatprep.subr.bf16.mxu0 %v2063_v5  ;;  %700 = vmatprep.subr.bf16.mxu1 %v2084_v12  ;;  %v2075_v20 = vld [vmem:[#allocation5 + $0x64] ss:$8 sps:$4 sm:$0xff]   ;;  %v2077_v21 = vld [vmem:[#allocation5 + $0x60] ss:$8 sps:$4 sm:$0xff]   ;;  %v2092_v22 = vld [vmem:[#allocation7 + $0x30] ss:$8 sps:$4 sm:$0xff]  }
  0x8e   : > { %v2093_v23 = vld [vmem:[#allocation7 + $0x44] ss:$8 sps:$4 sm:$0xff]   ;;  %v2078_v24 = vld [vmem:[#allocation5 + $0x74] ss:$8 sps:$4 sm:$0xff]   ;;  %v2080_v25 = vld [vmem:[#allocation5 + $0x70] ss:$8 sps:$4 sm:$0xff]  }
  0x8f   : > { %v2095_v27 = vld [vmem:[#allocation7 + $0x40] ss:$8 sps:$4 sm:$0xff]   ;;  %v2096_v28 = vld [vmem:[#allocation7 + $0x54] ss:$8 sps:$4 sm:$0xff]   ;;  %v2098_v29 = vld [vmem:[#allocation7 + $0x50] ss:$8 sps:$4 sm:$0xff]  }
  0x90   : > { %454 = vmatpush1.bf16.msra.mxu0 %v2065_v6  ;;  %701 = vmatpush1.bf16.msra.mxu1 %v2086_v14  ;;  %v2099_v30 = vld [vmem:[#allocation7 + $0x64] ss:$8 sps:$4 sm:$0xff]   ;;  %v2101_v32 = vld [vmem:[#allocation7 + $0x60] ss:$8 sps:$4 sm:$0xff]   ;;  %v2102_v33 = vld [vmem:[#allocation7 + $0x74] ss:$8 sps:$4 sm:$0xff]  }
  0x91   : > { %455 = vmatprep.subr.bf16.mxu0 %v2066_v7  ;;  %702 = vmatprep.subr.bf16.mxu1 %v2087_v15  ;;  %v2104_v34 = vld [vmem:[#allocation7 + $0x70] ss:$8 sps:$4 sm:$0xff]   ;;  %v2105_v35 = vld [vmem:[#allocation7 + $0x84] ss:$8 sps:$4 sm:$0xff]   ;;  %v2107_v36 = vld [vmem:[#allocation7 + $0x80] ss:$8 sps:$4 sm:$0xff]  }
  0x92   : > { %v2108_v37 = vld [vmem:[#allocation7 + $0x94] ss:$8 sps:$4 sm:$0xff]   ;;  %v2110_v38 = vld [vmem:[#allocation7 + $0x90] ss:$8 sps:$4 sm:$0xff]   ;;  %v2111_v39 = vld [vmem:[#allocation7 + $0xa4] ss:$8 sps:$4 sm:$0xff]  }
  0x93   : > { %v2113_v40 = vld [vmem:[#allocation7 + $0xa0] ss:$8 sps:$4 sm:$0xff]   ;;  %v2114_v41 = vld [vmem:[#allocation7 + $0xb4] ss:$8 sps:$4 sm:$0xff]   ;;  %v2116_v42 = vld [vmem:[#allocation7 + $0xb0] ss:$8 sps:$4 sm:$0xff]  }
  0x94   : > { %456 = vmatpush1.bf16.msra.mxu0 %v2068_v8  ;;  %703 = vmatpush1.bf16.msra.mxu1 %v2089_v18  ;;  %v2117_v43 = vld [vmem:[#allocation7 + $0xc4] ss:$8 sps:$4 sm:$0xff]   ;;  %v2119_v44 = vld [vmem:[#allocation7 + $0xc0] ss:$8 sps:$4 sm:$0xff]   ;;  %v2120_v45 = vld [vmem:[#allocation7 + $0xd4] ss:$8 sps:$4 sm:$0xff]  }
  0x95   : > { %457 = vmatprep.subr.bf16.mxu0 %v2069_v9  ;;  %704 = vmatprep.subr.bf16.mxu1 %v2090_v19  ;;  %v2122_v46 = vld [vmem:[#allocation7 + $0xd0] ss:$8 sps:$4 sm:$0xff]   ;;  %v2123_v47 = vld [vmem:[#allocation7 + $0xe4] ss:$8 sps:$4 sm:$0xff]   ;;  %v2125_v48 = vld [vmem:[#allocation7 + $0xe0] ss:$8 sps:$4 sm:$0xff]  }
  0x96   : > { %v2126_v49 = vld [vmem:[#allocation7 + $0xf4] ss:$8 sps:$4 sm:$0xff]   ;;  %v2128_v50 = vld [vmem:[#allocation7 + $0xf0] ss:$8 sps:$4 sm:$0xff]   ;;  %v2131_v52 = vld [vmem:[#allocation8 + $0x4] ss:$28 sps:$4 sm:$0xff]  }
  0x97   : > { %v2129_v51 = vld [vmem:[#allocation8] ss:$28 sps:$4 sm:$0xff]   ;;  %v2134_v53 = vld [vmem:[#allocation8 + $0xc] ss:$28 sps:$4 sm:$0xff]   ;;  %v2135_v55 = vld [vmem:[#allocation8 + $0x38] ss:$28 sps:$4 sm:$0xff]  }
  0x98   : > { %458 = vmatpush1.bf16.msra.mxu0 %v2071_v13  ;;  %705 = vmatpush1.bf16.msra.mxu1 %v2092_v22  ;;  %v2137_v54 = vld [vmem:[#allocation8 + $0x3c] ss:$28 sps:$4 sm:$0xff]   ;;  %v2143_v56 = vld [vmem:[#allocation8 + $0x74] ss:$28 sps:$4 sm:$0xff]   ;;  %v2149_v58 = vld [vmem:[#allocation8 + $0xac] ss:$28 sps:$4 sm:$0xff]  }
  0x99   : > { %459 = vmatprep.subr.bf16.mxu0 %v2072_v16  ;;  %706 = vmatprep.subr.bf16.mxu1 %v2093_v23  ;;  %v2141_v57 = vld [vmem:[#allocation8 + $0x70] ss:$28 sps:$4 sm:$0xff]   ;;  %v2147_v59 = vld [vmem:[#allocation8 + $0xa8] ss:$28 sps:$4 sm:$0xff]   ;;  %v2153_v61 = vld [vmem:[#allocation8 + $0xe0] ss:$28 sps:$4 sm:$0xff]   ;;  %v359_v16 = vlaneseq }
  0x9a   : > { %v2155_v60 = vld [vmem:[#allocation8 + $0xe4] ss:$28 sps:$4 sm:$0xff]   ;;  %v2161_v62 = vld [vmem:[#allocation8 + $0x11c] ss:$28 sps:$4 sm:$0xff]   ;;  %v2167_v0 = vld [vmem:[#allocation8 + $0x154] ss:$28 sps:$4 sm:$0xff]  }
  0x9b   : > { %v2159_v63 = vld [vmem:[#allocation8 + $0x118] ss:$28 sps:$4 sm:$0xff]   ;;  %v2165_v1 = vld [vmem:[#allocation8 + $0x150] ss:$28 sps:$4 sm:$0xff]   ;;  %v2171_v3 = vld [vmem:[#allocation8 + $0x188] ss:$28 sps:$4 sm:$0xff]  }
  0x9c   : > { %460 = vmatpush1.bf16.msra.mxu0 %v2074_v17  ;;  %707 = vmatpush1.bf16.msra.mxu1 %v2095_v27  ;;  %v2173_v2 = vld [vmem:[#allocation8 + $0x18c] ss:$28 sps:$4 sm:$0xff]   ;;  %v2179_v4 = vld [vmem:[#allocation8 + $0x1c4] ss:$28 sps:$4 sm:$0xff]   ;;  %v2185_v6 = vld [vmem:[#allocation8 + $0x1fc] ss:$28 sps:$4 sm:$0xff]  }
  0x9d   : > { %461 = vmatprep.subr.bf16.mxu0 %v2075_v20  ;;  %708 = vmatprep.subr.bf16.mxu1 %v2096_v28  ;;  %v2177_v5 = vld [vmem:[#allocation8 + $0x1c0] ss:$28 sps:$4 sm:$0xff]   ;;  %v2183_v7 = vld [vmem:[#allocation8 + $0x1f8] ss:$28 sps:$4 sm:$0xff]   ;;  %v2189_v9 = vld [vmem:[#allocation8 + $0x230] ss:$28 sps:$4 sm:$0xff]  }
  0x9e   : > { %v2191_v8 = vld [vmem:[#allocation8 + $0x234] ss:$28 sps:$4 sm:$0xff]   ;;  %v2197_v10 = vld [vmem:[#allocation8 + $0x26c] ss:$28 sps:$4 sm:$0xff]   ;;  %v2203_v12 = vld [vmem:[#allocation8 + $0x2a4] ss:$28 sps:$4 sm:$0xff]  }
  0x9f   : > { %v2195_v11 = vld [vmem:[#allocation8 + $0x268] ss:$28 sps:$4 sm:$0xff]   ;;  %v2201_v13 = vld [vmem:[#allocation8 + $0x2a0] ss:$28 sps:$4 sm:$0xff]   ;;  %v2207_v15 = vld [vmem:[#allocation8 + $0x2d8] ss:$28 sps:$4 sm:$0xff]  }
  0xa0   : > { %462 = vmatpush1.bf16.msra.mxu0 %v2077_v21  ;;  %709 = vmatpush1.bf16.msra.mxu1 %v2098_v29  ;;  %v2209_v14 = vld [vmem:[#allocation8 + $0x2dc] ss:$28 sps:$4 sm:$0xff]   ;;  %v2751_v17 = vshrl.u32 %v359_v16, 7  ;;  %v357_v19 = vld [vmem:[%s2845_s2] sm:$0x3]  ;;  %s1973_s23 = smul.u32 56, %s2732_s15 }
  0xa1   : > { %463 = vmatprep.subr.bf16.mxu0 %v2078_v24  ;;  %710 = vmatprep.subr.bf16.mxu1 %v2099_v30  ;;  %s1974_s29 = smul.u32 896, %s2564_s28  ;;  %s1662_s16 = scalar_lea.sflag [#allocation4], %s2732_s15 }
  0xa2   : > { %v2754_v18 = vsub.s32 0, %v2751_v17  ;;  %v2760_v20 = vsub.s32 1, %v2751_v17  ;;  %s2783_s12 = scalar_lea.vmem [#allocation10], %s1973_s23  ;;  %s2502_s28 = smov [#allocation10]  }
  0xa3   : > { %s1676_s11 = sshll.u32 %s2783_s12, 4  ;;  %s2798_s21 = scalar_lea.hbm %s2850_s7, %s1974_s29  ;;  %s2800_s11 = int_to_ptr.vmem [resolvable:$true] %s1676_s11 }
  0xa4   : > { %464 = vmatpush1.bf16.msra.mxu0 %v2080_v25  ;;  %711 = vmatpush1.bf16.msra.mxu1 %v2101_v32  ;;  %v362_v21 = vrot.slane %v357_v19, %v2754_v18  ;;  %v366_v22 = vrot.slane %v357_v19, %v2760_v20  ;;  %v2132_v32 = vld [vmem:[#allocation8 + $0x8] ss:$28 sps:$4 sm:$0xff]   ;;  %s2417_s30 = scalar_lea.vmem %s2800_s11, 896  ;;  %s2421_s9 = sshll.u32 %s2502_s28, 4  ;;  %s2422_s9 = int_to_ptr.vmem [resolvable:$false] %s2421_s9 }
  0xa5   : > { %712 = vmatprep.subr.bf16.mxu1 %v2102_v33  ;;  %1484 = vmatprep.subr.bf16.mxu0 %v2131_v52  ;;  %v2194_v52 = vld [vmem:[#allocation8 + $0x23c] ss:$28 sps:$4 sm:$0xff]   ;;  %p2418_p0 = scmp.ne.s32.totalorder %s2800_s11, %s2417_s30  ;;  %s2423_s10 = scalar_lea.vmem %s2422_s9, 1792 }
  0xa6   : > { %p2424_p11 = scmp.lt.s32.totalorder %s2800_s11, %s2422_s9  ;;  %p2425_p2 = scmp.lt.s32.totalorder %s2423_s10, %s2417_s30 }
  0xa7   : > { %482 = vmatmul.mubr.bf16.vlgmr.msra.gmra.mrb[0].mxu0 %v340_v31  ;;  %p2419_p3 = pnand %p2418_p0, %p2687_p5 }
  0xa8   : > { %713 = vmatpush1.bf16.msra.mxu1 %v2104_v34  ;;  %1485 = vmatpush1.bf16.msra.mxu0 %v2129_v51  ;;  %v2140_v34 = vld [vmem:[#allocation8 + $0x44] ss:$28 sps:$4 sm:$0xff]   ;;  %p2426_p1 = por %p2425_p2, %p2424_p11 }
  0xa9   : > { %714 = vmatprep.subr.bf16.mxu1 %v2105_v35  ;;  %1486 = vmatprep.subr.bf16.mxu0 %v2137_v54  ;;  %v2138_v35 = vld [vmem:[#allocation8 + $0x40] ss:$28 sps:$4 sm:$0xff]   ;;  %v2200_v54 = vld [vmem:[#allocation8 + $0x274] ss:$28 sps:$4 sm:$0xff]   ;;  %p2420_p7 = pneg %p2419_p3 }
  0xaa   : > { %v2186_v51 = vld [vmem:[#allocation8 + $0x200] ss:$28 sps:$4 sm:$0xff]  }
  0xab   : > { %p2427_p4 = pnand %p2426_p1, %p2420_p7 }
  0xac   : > { %715 = vmatpush1.bf16.msra.mxu1 %v2107_v36  ;;  %1487 = vmatpush1.bf16.msra.mxu0 %v2135_v55  ;;  %v2146_v36 = vld [vmem:[#allocation8 + $0x7c] ss:$28 sps:$4 sm:$0xff]   ;;  %v2198_v55 = vld [vmem:[#allocation8 + $0x270] ss:$28 sps:$4 sm:$0xff]  }
  0xad   : > { %716 = vmatprep.subr.bf16.mxu1 %v2108_v37  ;;  %1488 = vmatprep.subr.bf16.mxu0 %v2143_v56  ;;  %v2144_v37 = vld [vmem:[#allocation8 + $0x78] ss:$28 sps:$4 sm:$0xff]   ;;  %v2206_v56 = vld [vmem:[#allocation8 + $0x2ac] ss:$28 sps:$4 sm:$0xff]  }
  0xb0   : > { %717 = vmatpush1.bf16.msra.mxu1 %v2110_v38  ;;  %1489 = vmatpush1.bf16.msra.mxu0 %v2141_v57  ;;  %v2152_v38 = vld [vmem:[#allocation8 + $0xb4] ss:$28 sps:$4 sm:$0xff]   ;;  %v2204_v57 = vld [vmem:[#allocation8 + $0x2a8] ss:$28 sps:$4 sm:$0xff]  }
  0xb1   : > { %718 = vmatprep.subr.bf16.mxu1 %v2111_v39  ;;  %1490 = vmatprep.subr.bf16.mxu0 %v2149_v58  ;;  %v2150_v39 = vld [vmem:[#allocation8 + $0xb0] ss:$28 sps:$4 sm:$0xff]   ;;  %v2212_v58 = vld [vmem:[#allocation8 + $0x2e4] ss:$28 sps:$4 sm:$0xff]  }
  0xb4   : > { %719 = vmatpush1.bf16.msra.mxu1 %v2113_v40  ;;  %1491 = vmatpush1.bf16.msra.mxu0 %v2147_v59  ;;  %v2158_v40 = vld [vmem:[#allocation8 + $0xec] ss:$28 sps:$4 sm:$0xff]   ;;  %v2210_v59 = vld [vmem:[#allocation8 + $0x2e0] ss:$28 sps:$4 sm:$0xff]  }
  0xb5   : > { %720 = vmatprep.subr.bf16.mxu1 %v2114_v41  ;;  %1492 = vmatprep.subr.bf16.mxu0 %v2155_v60  ;;  %v2156_v41 = vld [vmem:[#allocation8 + $0xe8] ss:$28 sps:$4 sm:$0xff]   ;;  %v2215_v60 = vld [vmem:[#allocation8 + $0x314] ss:$28 sps:$4 sm:$0xff]  }
  0xb8   : > { %721 = vmatpush1.bf16.msra.mxu1 %v2116_v42  ;;  %1493 = vmatpush1.bf16.msra.mxu0 %v2153_v61  ;;  %v2164_v42 = vld [vmem:[#allocation8 + $0x124] ss:$28 sps:$4 sm:$0xff]   ;;  %v2218_v61 = vld [vmem:[#allocation8 + $0x31c] ss:$28 sps:$4 sm:$0xff]  }
  0xb9   : > { %722 = vmatprep.subr.bf16.mxu1 %v2117_v43  ;;  %1494 = vmatprep.subr.bf16.mxu0 %v2161_v62  ;;  %v2162_v43 = vld [vmem:[#allocation8 + $0x120] ss:$28 sps:$4 sm:$0xff]   ;;  %v2213_v62 = vld [vmem:[#allocation8 + $0x310] ss:$28 sps:$4 sm:$0xff]  }
  0xbc   : > { %723 = vmatpush1.bf16.msra.mxu1 %v2119_v44  ;;  %1495 = vmatpush1.bf16.msra.mxu0 %v2159_v63  ;;  %v2170_v44 = vld [vmem:[#allocation8 + $0x15c] ss:$28 sps:$4 sm:$0xff]  }
  0xbd   : > { %724 = vmatprep.subr.bf16.mxu1 %v2120_v45  ;;  %1496 = vmatprep.subr.bf16.mxu0 %v2167_v0  ;;  %v2168_v45 = vld [vmem:[#allocation8 + $0x158] ss:$28 sps:$4 sm:$0xff]   ;;  %v2221_v0 = vld [vmem:[#allocation8 + $0x34c] ss:$28 sps:$4 sm:$0xff]  }
  0xbe   : > { %v2216_v63 = vld [vmem:[#allocation8 + $0x318] ss:$28 sps:$4 sm:$0xff]  }
  0xc0   : > { %725 = vmatpush1.bf16.msra.mxu1 %v2122_v46  ;;  %1497 = vmatpush1.bf16.msra.mxu0 %v2165_v1  ;;  %v2176_v46 = vld [vmem:[#allocation8 + $0x194] ss:$28 sps:$4 sm:$0xff]  }
  0xc1   : > { %726 = vmatprep.subr.bf16.mxu1 %v2123_v47  ;;  %1498 = vmatprep.subr.bf16.mxu0 %v2173_v2  ;;  %v2174_v47 = vld [vmem:[#allocation8 + $0x190] ss:$28 sps:$4 sm:$0xff]   ;;  %v2219_v2 = vld [vmem:[#allocation8 + $0x348] ss:$28 sps:$4 sm:$0xff]  }
  0xc2   : > { %v2224_v1 = vld [vmem:[#allocation8 + $0x354] ss:$28 sps:$4 sm:$0xff]  }
  0xc4   : > { %727 = vmatpush1.bf16.msra.mxu1 %v2125_v48  ;;  %1499 = vmatpush1.bf16.msra.mxu0 %v2171_v3  ;;  %v2182_v48 = vld [vmem:[#allocation8 + $0x1cc] ss:$28 sps:$4 sm:$0xff]  }
  0xc5   : > { %728 = vmatprep.subr.bf16.mxu1 %v2126_v49  ;;  %1500 = vmatprep.subr.bf16.mxu0 %v2179_v4  ;;  %v2180_v49 = vld [vmem:[#allocation8 + $0x1c8] ss:$28 sps:$4 sm:$0xff]   ;;  %v2222_v3 = vld [vmem:[#allocation8 + $0x350] ss:$28 sps:$4 sm:$0xff]  }
  0xc6   : > { %v2227_v4 = vld [vmem:[#allocation8 + $0x14] ss:$28 sps:$4 sm:$0xff]  }
  0xc8   : > { %729 = vmatpush1.bf16.msra.mxu1 %v2128_v50  ;;  %1501 = vmatpush1.bf16.msra.mxu0 %v2177_v5  ;;  %v2188_v50 = vld [vmem:[#allocation8 + $0x204] ss:$28 sps:$4 sm:$0xff]   ;;  %v2228_v5 = vld [vmem:[#allocation8 + $0x1d8] ss:$28 sps:$4 sm:$0xff]  }
  0xc9   : > { %1525 = vmatprep.subr.bf16.mxu1 %v2134_v53  ;;  %1502 = vmatprep.subr.bf16.mxu0 %v2185_v6  ;;  %v2192_v53 = vld [vmem:[#allocation8 + $0x238] ss:$28 sps:$4 sm:$0xff]   ;;  %v526_v6 = vld [vmem:[%s2847_s4] sm:$0x3] }
  0xcc   : > { %1503 = vmatpush1.bf16.msra.mxu0 %v2183_v7  ;;  %v531_v7 = vrot.slane %v526_v6, %v2754_v18 }
  0xcd   : > { %1504 = vmatprep.subr.bf16.mxu0 %v2191_v8  ;;  %v535_v8 = vrot.slane %v526_v6, %v2760_v20  ;;  %v887_v6 = vsub.s32 3, %v2751_v17 }
  0xd0   : > { %1505 = vmatpush1.bf16.msra.mxu0 %v2189_v9 }
  0xd1   : > { %1506 = vmatprep.subr.bf16.mxu0 %v2197_v10 }
  0xd4   : > { %1507 = vmatpush1.bf16.msra.mxu0 %v2195_v11 }
  0xd5   : > { %1508 = vmatprep.subr.bf16.mxu0 %v2203_v12 }
  0xd8   : > { %1509 = vmatpush1.bf16.msra.mxu0 %v2201_v13 }
  0xd9   : > { %1510 = vmatprep.subr.bf16.mxu0 %v2209_v14 }
  0xdc   : > { %1511 = vmatpush1.bf16.msra.mxu0 %v2207_v15 }
  0xdd   : > { %1512 = vmatprep.subr.bf16.mxu0 %v2215_v60  ;;  %v2279_v60 = vld [vmem:[#allocation8 + $0x2b4] ss:$28 sps:$4 sm:$0xff]  }
  0xe0   : > { %1513 = vmatpush1.bf16.msra.mxu0 %v2213_v62  ;;  %v2282_v62 = vld [vmem:[#allocation8 + $0x2ec] ss:$28 sps:$4 sm:$0xff]  }
  0xe1   : > { %1514 = vmatprep.subr.bf16.mxu0 %v2221_v0  ;;  %v2285_v0 = vld [vmem:[#allocation8 + $0x324] ss:$28 sps:$4 sm:$0xff]  }
  0xe4   : > { %1515 = vmatpush1.bf16.msra.mxu0 %v2219_v2  ;;  %v2288_v2 = vld [vmem:[#allocation8 + $0x35c] ss:$28 sps:$4 sm:$0xff]  }
  0xe5   : > { %1566 = vmatprep.subr.bf16.mxu0 %v2227_v4  ;;  %v883_v4 = vsub.s32 2, %v2751_v17 }
 0x17a   : > { %v483_v23 = vpop.f32.mrb[0].mxu0 }
 0x17b   : > { %v484_v24 = vadd.f32 %v483_v23, %v362_v21  ;;  %v485_v25 = vpop.f32.mrb[1].mxu0  ;;  %v2225_v21 = vld [vmem:[#allocation8 + $0x10] ss:$28 sps:$4 sm:$0xff]  }
 0x17c   : > { %v486_v26 = vadd.f32 %v485_v25, %v366_v22  ;;  %v487_v27 = vpop.f32.mrb[2].mxu0  ;;  %v2229_v22 = vld [vmem:[#allocation8 + $0x18] ss:$28 sps:$4 sm:$0xff]   ;;  %v2233_v25 = vld [vmem:[#allocation8 + $0x210] ss:$28 sps:$4 sm:$0xff]  }
 0x17d   : > { %v490_v28 = vmax.f32 %v484_v24, 0.0  ;;  %v488_v29 = vpop.f32.mrb[3].mxu0  ;;  %v2232_v24 = vld [vmem:[#allocation8 + $0x4c] ss:$28 sps:$4 sm:$0xff]  }
 0x17e   : > { %v491_v30 = vmax.f32 %v486_v26, 0.0  ;;  %v2230_v26 = vld [vmem:[#allocation8 + $0x48] ss:$28 sps:$4 sm:$0xff]   ;;  %v2234_v27 = vld [vmem:[#allocation8 + $0x50] ss:$28 sps:$4 sm:$0xff]  }
 0x17f   : > { %v492_v33 = vpack.c.bf16 %v490_v28, %v490_v28  ;;  %v2237_v28 = vld [vmem:[#allocation8 + $0x84] ss:$28 sps:$4 sm:$0xff]  }
 0x180   : > { %v493_v31 = vpack.c.bf16 %v491_v30, %v491_v30  ;;  %v2238_v29 = vld [vmem:[#allocation8 + $0x248] ss:$28 sps:$4 sm:$0xff]   ;;  %v2235_v30 = vld [vmem:[#allocation8 + $0x80] ss:$28 sps:$4 sm:$0xff]  }
 0x182   : > { %730 = vmatprep.mubr.bf16.mxu1 %v493_v31  ;;  %v2239_v31 = vld [vmem:[#allocation8 + $0x88] ss:$28 sps:$4 sm:$0xff]  }
 0x183   : > { %731 = vmatmul.mubr.bf16.vlgmr.msra.gmra.mrb[0].mxu1 %v492_v33  ;;  %v2243_v33 = vld [vmem:[#allocation8 + $0x280] ss:$28 sps:$4 sm:$0xff]  }
 0x184   : > { %1526 = vmatpush1.bf16.msra.mxu1 %v2132_v32  ;;  %v2242_v32 = vld [vmem:[#allocation8 + $0xbc] ss:$28 sps:$4 sm:$0xff]  }
 0x185   : > { %1527 = vmatprep.subr.bf16.mxu1 %v2140_v34  ;;  %v2240_v34 = vld [vmem:[#allocation8 + $0xb8] ss:$28 sps:$4 sm:$0xff]  }
 0x188   : > { %1528 = vmatpush1.bf16.msra.mxu1 %v2138_v35  ;;  %v2244_v35 = vld [vmem:[#allocation8 + $0xc0] ss:$28 sps:$4 sm:$0xff]  }
 0x189   : > { %1529 = vmatprep.subr.bf16.mxu1 %v2146_v36  ;;  %v2247_v36 = vld [vmem:[#allocation8 + $0xf4] ss:$28 sps:$4 sm:$0xff]  }
 0x18c   : > { %1530 = vmatpush1.bf16.msra.mxu1 %v2144_v37  ;;  %v2248_v37 = vld [vmem:[#allocation8 + $0x2b8] ss:$28 sps:$4 sm:$0xff]  }
 0x18d   : > { %1531 = vmatprep.subr.bf16.mxu1 %v2152_v38  ;;  %v2245_v38 = vld [vmem:[#allocation8 + $0xf0] ss:$28 sps:$4 sm:$0xff]  }
 0x190   : > { %1532 = vmatpush1.bf16.msra.mxu1 %v2150_v39  ;;  %v2249_v39 = vld [vmem:[#allocation8 + $0xf8] ss:$28 sps:$4 sm:$0xff]  }
 0x191   : > { %1533 = vmatprep.subr.bf16.mxu1 %v2158_v40  ;;  %v2252_v40 = vld [vmem:[#allocation8 + $0x12c] ss:$28 sps:$4 sm:$0xff]  }
 0x194   : > { %1534 = vmatpush1.bf16.msra.mxu1 %v2156_v41  ;;  %v2253_v41 = vld [vmem:[#allocation8 + $0x2f0] ss:$28 sps:$4 sm:$0xff]  }
 0x195   : > { %1535 = vmatprep.subr.bf16.mxu1 %v2164_v42  ;;  %v2250_v42 = vld [vmem:[#allocation8 + $0x128] ss:$28 sps:$4 sm:$0xff]  }
 0x198   : > { %1536 = vmatpush1.bf16.msra.mxu1 %v2162_v43  ;;  %v2254_v43 = vld [vmem:[#allocation8 + $0x130] ss:$28 sps:$4 sm:$0xff]  }
 0x199   : > { %1537 = vmatprep.subr.bf16.mxu1 %v2170_v44  ;;  %v2257_v44 = vld [vmem:[#allocation8 + $0x164] ss:$28 sps:$4 sm:$0xff]  }
 0x19c   : > { %1538 = vmatpush1.bf16.msra.mxu1 %v2168_v45  ;;  %v2258_v45 = vld [vmem:[#allocation8 + $0x328] ss:$28 sps:$4 sm:$0xff]  }
 0x19d   : > { %1539 = vmatprep.subr.bf16.mxu1 %v2176_v46  ;;  %v2255_v46 = vld [vmem:[#allocation8 + $0x160] ss:$28 sps:$4 sm:$0xff]  }
 0x1a0   : > { %1540 = vmatpush1.bf16.msra.mxu1 %v2174_v47  ;;  %v2259_v47 = vld [vmem:[#allocation8 + $0x168] ss:$28 sps:$4 sm:$0xff]  }
 0x1a1   : > { %1541 = vmatprep.subr.bf16.mxu1 %v2182_v48  ;;  %v2262_v48 = vld [vmem:[#allocation8 + $0x19c] ss:$28 sps:$4 sm:$0xff]  }
 0x1a4   : > { %1542 = vmatpush1.bf16.msra.mxu1 %v2180_v49  ;;  %v2263_v49 = vld [vmem:[#allocation8 + $0x360] ss:$28 sps:$4 sm:$0xff]  }
 0x1a5   : > { %1543 = vmatprep.subr.bf16.mxu1 %v2188_v50  ;;  %v2260_v50 = vld [vmem:[#allocation8 + $0x198] ss:$28 sps:$4 sm:$0xff]  }
 0x1a8   : > { %1544 = vmatpush1.bf16.msra.mxu1 %v2186_v51  ;;  %v2264_v51 = vld [vmem:[#allocation8 + $0x1a0] ss:$28 sps:$4 sm:$0xff]  }
 0x1a9   : > { %1545 = vmatprep.subr.bf16.mxu1 %v2194_v52  ;;  %v2267_v52 = vld [vmem:[#allocation8 + $0x1d4] ss:$28 sps:$4 sm:$0xff]  }
 0x1ac   : > { %1546 = vmatpush1.bf16.msra.mxu1 %v2192_v53  ;;  %v2265_v53 = vld [vmem:[#allocation8 + $0x1d0] ss:$28 sps:$4 sm:$0xff]  }
 0x1ad   : > { %1547 = vmatprep.subr.bf16.mxu1 %v2200_v54  ;;  %v2270_v54 = vld [vmem:[#allocation8 + $0x20c] ss:$28 sps:$4 sm:$0xff]  }
 0x1b0   : > { %1548 = vmatpush1.bf16.msra.mxu1 %v2198_v55  ;;  %v2268_v55 = vld [vmem:[#allocation8 + $0x208] ss:$28 sps:$4 sm:$0xff]  }
 0x1b1   : > { %1549 = vmatprep.subr.bf16.mxu1 %v2206_v56  ;;  %v2273_v56 = vld [vmem:[#allocation8 + $0x244] ss:$28 sps:$4 sm:$0xff]  }
 0x1b4   : > { %1550 = vmatpush1.bf16.msra.mxu1 %v2204_v57  ;;  %v2271_v57 = vld [vmem:[#allocation8 + $0x240] ss:$28 sps:$4 sm:$0xff]  }
 0x1b5   : > { %1551 = vmatprep.subr.bf16.mxu1 %v2212_v58  ;;  %v2276_v58 = vld [vmem:[#allocation8 + $0x27c] ss:$28 sps:$4 sm:$0xff]  }
 0x1b8   : > { %1552 = vmatpush1.bf16.msra.mxu1 %v2210_v59  ;;  %v2274_v59 = vld [vmem:[#allocation8 + $0x278] ss:$28 sps:$4 sm:$0xff]  }
 0x1b9   : > { %1553 = vmatprep.subr.bf16.mxu1 %v2218_v61  ;;  %v2277_v61 = vld [vmem:[#allocation8 + $0x2b0] ss:$28 sps:$4 sm:$0xff]  }
 0x1bc   : > { %1554 = vmatpush1.bf16.msra.mxu1 %v2216_v63  ;;  %v2280_v63 = vld [vmem:[#allocation8 + $0x2e8] ss:$28 sps:$4 sm:$0xff]  }
 0x1bd   : > { %1555 = vmatprep.subr.bf16.mxu1 %v2224_v1  ;;  %v2283_v1 = vld [vmem:[#allocation8 + $0x320] ss:$28 sps:$4 sm:$0xff]  }
 0x1c0   : > { %1556 = vmatpush1.bf16.msra.mxu1 %v2222_v3  ;;  %v2286_v3 = vld [vmem:[#allocation8 + $0x358] ss:$28 sps:$4 sm:$0xff]  }
 0x1c1   : > { %1951 = vmatprep.subr.bf16.mxu1 %v2228_v5  ;;  %v871_v5 = vld [vmem:[%s2849_s6] sm:$0xff] }
 0x256   : > { %v732_v9 = vpop.f32.mrb[0].mxu1 }
 0x257   : > { %v733_v10 = vadd.f32 %v732_v9, %v531_v7  ;;  %v734_v11 = vpop.f32.mrb[1].mxu1  ;;  %v876_v7 = vrot.slane %v871_v5, %v2754_v18  ;;  %v880_v9 = vrot.slane %v871_v5, %v2760_v20 }
 0x258   : > { %v735_v12 = vadd.f32 %v734_v11, %v535_v8  ;;  %v736_v13 = vpop.f32.mrb[2].mxu1  ;;  %v884_v8 = vrot.slane %v871_v5, %v883_v4 }
 0x259   : > { %v739_v14 = vmax.f32 %v733_v10, 0.0  ;;  %v737_v15 = vpop.f32.mrb[3].mxu1  ;;  %v888_v10 = vrot.slane %v871_v5, %v887_v6 }
 0x25a   : > { %v740_v16 = vmax.f32 %v735_v12, 0.0 }
 0x25b   : > { %v2769_v23 = vpack.c.bf16 %v739_v14, %v739_v14 }
 0x25c   : > { %v742_v19 = vpack.c.bf16 %v740_v16, %v740_v16 }
 0x25e   : > { %1516 = vmatprep.mubr.bf16.mxu0 %v742_v19  ;;  %1557 = vmatprep.mubr.bf16.mxu1 %v742_v19 }
 0x25f   : > { %1517 = vmatmul.mubr.bf16.vlgmr.msra.gmra.mrb[4].mxu0 %v2769_v23  ;;  %1558 = vmatmul.mubr.bf16.vlgmr.msra.gmra.mrb[4].mxu1 %v2769_v23 }
 0x260   : > { %1567 = vmatpush1.bf16.msra.mxu0 %v2225_v21  ;;  %1952 = vmatpush3.bf16.msra.mxu1 %v2229_v22 }
 0x261   : > { %1598 = vmatprep.mubr.bf16.mxu0 %v742_v19  ;;  %1639 = vmatprep.mubr.bf16.mxu1 %v742_v19 }
 0x262   : > { %1568 = vmatprep.subr.bf16.mxu0 %v2232_v24  ;;  %1953 = vmatprep.subr.bf16.mxu1 %v2233_v25 }
 0x264   : > { %1569 = vmatpush1.bf16.msra.mxu0 %v2230_v26  ;;  %1954 = vmatpush3.bf16.msra.mxu1 %v2234_v27 }
 0x265   : > { %1570 = vmatprep.subr.bf16.mxu0 %v2237_v28  ;;  %1955 = vmatprep.subr.bf16.mxu1 %v2238_v29  ;;  %v899_v28 = vsub.s32 6, %v2751_v17 }
 0x268   : > { %1571 = vmatpush1.bf16.msra.mxu0 %v2235_v30  ;;  %1956 = vmatpush3.bf16.msra.mxu1 %v2239_v31  ;;  %v900_v30 = vrot.slane %v871_v5, %v899_v28 }
 0x269   : > { %1572 = vmatprep.subr.bf16.mxu0 %v2242_v32  ;;  %1957 = vmatprep.subr.bf16.mxu1 %v2243_v33 }
 0x26c   : > { %1573 = vmatpush1.bf16.msra.mxu0 %v2240_v34  ;;  %1958 = vmatpush3.bf16.msra.mxu1 %v2244_v35 }
 0x26d   : > { %1574 = vmatprep.subr.bf16.mxu0 %v2247_v36  ;;  %1959 = vmatprep.subr.bf16.mxu1 %v2248_v37  ;;  %v891_v37 = vsub.s32 4, %v2751_v17 }
 0x270   : > { %1575 = vmatpush1.bf16.msra.mxu0 %v2245_v38  ;;  %1960 = vmatpush3.bf16.msra.mxu1 %v2249_v39  ;;  %v895_v38 = vsub.s32 5, %v2751_v17  ;;  %v892_v39 = vrot.slane %v871_v5, %v891_v37 }
 0x271   : > { %1576 = vmatprep.subr.bf16.mxu0 %v2252_v40  ;;  %1961 = vmatprep.subr.bf16.mxu1 %v2253_v41 }
 0x272   : > { %v896_v40 = vrot.slane %v871_v5, %v895_v38 }
 0x274   : > { %1577 = vmatpush1.bf16.msra.mxu0 %v2250_v42  ;;  %1962 = vmatpush3.bf16.msra.mxu1 %v2254_v43 }
 0x275   : > { %1578 = vmatprep.subr.bf16.mxu0 %v2257_v44  ;;  %1963 = vmatprep.subr.bf16.mxu1 %v2258_v45 }
 0x278   : > { %1579 = vmatpush1.bf16.msra.mxu0 %v2255_v46  ;;  %1964 = vmatpush3.bf16.msra.mxu1 %v2259_v47 }
 0x279   : > { %1580 = vmatprep.subr.bf16.mxu0 %v2262_v48  ;;  %1965 = vmatprep.subr.bf16.mxu1 %v2263_v49 }
 0x27c   : > { %1581 = vmatpush1.bf16.msra.mxu0 %v2260_v50  ;;  %1966 = vmatpush3.bf16.msra.mxu1 %v2264_v51 }
 0x27d   : > { %1582 = vmatprep.subr.bf16.mxu0 %v2267_v52 }
 0x27f   : > { %1640 = vmatmul.mubr.bf16.vlgmr.msra.gmra.mrb[8].mxu1 %v2769_v23 }
 0x280   : > { %1583 = vmatpush1.bf16.msra.mxu0 %v2265_v53 }
 0x281   : > { %1584 = vmatprep.subr.bf16.mxu0 %v2270_v54 }
 0x284   : > { %1585 = vmatpush1.bf16.msra.mxu0 %v2268_v55 }
 0x285   : > { %1586 = vmatprep.subr.bf16.mxu0 %v2273_v56 }
 0x288   : > { %1587 = vmatpush1.bf16.msra.mxu0 %v2271_v57 }
 0x289   : > { %1588 = vmatprep.subr.bf16.mxu0 %v2276_v58 }
 0x28c   : > { %1589 = vmatpush1.bf16.msra.mxu0 %v2274_v59 }
 0x28d   : > { %1590 = vmatprep.subr.bf16.mxu0 %v2279_v60 }
 0x290   : > { %1591 = vmatpush1.bf16.msra.mxu0 %v2277_v61 }
 0x291   : > { %1592 = vmatprep.subr.bf16.mxu0 %v2282_v62 }
 0x294   : > { %1593 = vmatpush1.bf16.msra.mxu0 %v2280_v63 }
 0x295   : > { %1594 = vmatprep.subr.bf16.mxu0 %v2285_v0 }
 0x298   : > { %1595 = vmatpush1.bf16.msra.mxu0 %v2283_v1 }
 0x299   : > { %1596 = vmatprep.subr.bf16.mxu0 %v2288_v2 }
 0x29c   : > { %1597 = vmatpush1.bf16.msra.mxu0 %v2286_v3 }
 0x29f   : > { %1599 = vmatmul.mubr.bf16.vlgmr.msra.gmra.mrb[8].mxu0 %v2769_v23 }
 0x332   : > { %v1518_v11 = vpop.f32.mrb[4].mxu0  ;;  %v1559_v12 = vpop.f32.mrb[4].mxu1 }
 0x333   : > { %v1519_v13 = vadd.f32 %v1518_v11, %v876_v7  ;;  %v1560_v14 = vadd.f32 %v1559_v12, %v884_v8  ;;  %v1520_v15 = vpop.f32.mrb[5].mxu0  ;;  %v1561_v16 = vpop.f32.mrb[5].mxu1 }
 0x334   : > { %v1521_v19 = vadd.f32 %v1520_v15, %v880_v9  ;;  %v1562_v21 = vadd.f32 %v1561_v16, %v888_v10  ;;  %v1522_v22 = vpop.f32.mrb[6].mxu0  ;;  %v1563_v23 = vpop.f32.mrb[6].mxu1 }
 0x335   : > { %2289 = vtanh.f32 %v1519_v13  ;;  %v1523_v24 = vpop.f32.mrb[7].mxu0  ;;  %v1564_v25 = vpop.f32.mrb[7].mxu1 }
 0x336   : > { %2291 = vtanh.f32 %v1560_v14 }
 0x337   : > { %2293 = vtanh.f32 %v1521_v19 }
 0x338   : > { %2295 = vtanh.f32 %v1562_v21 }
 0x33f   : > { %v2290_v18 = vpop.eup %2289 }
 0x340   : > { %v2292_v20 = vpop.eup %2291  ;;  %1654 = vst [vmem:[%s2783_s12] sm:$0xff] %v2290_v18 }
 0x341   : > { %v2294_v26 = vpop.eup %2293  ;;  %1656 = vst [vmem:[%s2783_s12 + $0x10] sm:$0xff] %v2292_v20 }
 0x342   : > { %v2296_v27 = vpop.eup %2295  ;;  %1655 = vst [vmem:[%s2783_s12 + $0x8] sm:$0xff] %v2294_v26 }
 0x343   : > { %1657 = vst [vmem:[%s2783_s12 + $0x18] sm:$0xff] %v2296_v27 }
 0x352   : > { %v1967_v29 = vpop.f32.mrb[8].mxu1 }
 0x353   : > { %v1968_v31 = vpop.f32.mrb[9].mxu1 }
 0x354   : > { %v1969_v32 = vadd.f32 %v1968_v31, %v1967_v29  ;;  %v1970_v33 = vpop.f32.mrb[10].mxu1 }
 0x355   : > { %v1971_v34 = vpop.f32.mrb[11].mxu1 }
 0x356   : > { %v1642_v35 = vadd.f32 %v1969_v32, %v900_v30 }
 0x358   : > { %2297 = vtanh.f32 %v1642_v35 }
 0x362   : > { %v2298_v36 = vpop.eup %2297 }
 0x363   : > { %1660 = vst [vmem:[%s2783_s12 + $0x30] sm:$0xff] %v2298_v36 }
 0x372   : > { %v1600_v41 = vpop.f32.mrb[8].mxu0 }
 0x373   : > { %v1601_v42 = vadd.f32 %v1600_v41, %v892_v39  ;;  %v1602_v43 = vpop.f32.mrb[9].mxu0 }
 0x374   : > { %v1603_v44 = vadd.f32 %v1602_v43, %v896_v40  ;;  %v1604_v45 = vpop.f32.mrb[10].mxu0 }
 0x375   : > { %2299 = vtanh.f32 %v1601_v42  ;;  %v1605_v46 = vpop.f32.mrb[11].mxu0 }
 0x376   : > { %2301 = vtanh.f32 %v1603_v44 }
 0x37f   : > { %v2300_v47 = vpop.eup %2299 }
 0x380   : > { %v2302_v17 = vpop.eup %2301  ;;  %1658 = vst [vmem:[%s2783_s12 + $0x20] sm:$0xff] %v2300_v47 }
 0x381   : > { %1659 = vst [vmem:[%s2783_s12 + $0x28] sm:$0xff] %v2302_v17 }
 0x382   : > { %2430 = shalt.err (!%p2427_p4)
}
 0x383   : > { %s2431_s15 = scalar_lea.hbm %s2798_s21, 896  ;;  %s2435_s13 = scalar_lea.hbm %s2850_s7, 3584 }
 0x384   : > { %p2432_p13 = scmp.ne.s32.totalorder %s2798_s21, %s2431_s15  ;;  %p2436_p8 = scmp.lt.u32.totalorder %s2798_s21, %s2850_s7 }
 0x385   : > { %p2437_p12 = scmp.lt.u32.totalorder %s2435_s13, %s2431_s15  ;;  %p2439_p0 = scmp.lt.u32.totalorder %s2431_s15, %s2798_s21 }
 0x386   : > { %p2433_p9 = pnand %p2432_p13, %p2687_p5 }
 0x387   : > { %p2438_p6 = por %p2437_p12, %p2436_p8 }
 0x388   : > { %p2434_p10 = pneg %p2433_p9 }
 0x389   : > { %p2440_p3 = por %p2439_p0, %p2438_p6 }
 0x38b   : > { %p2441_p7 = pnand %p2440_p3, %p2434_p10 }
 0x38d   : > { %2444 = shalt.err (!%p2441_p7)
}
 0x38e   : > { %1989 = dma.vmem_to_hbm [thread:$0]  (%p2687_p5), %s2800_s11, 896, %s2798_s21, %s1662_s16  }
 0x38f PF: > { %s2870_s29 = sld [smem:[#allocation15_spill]]  ;;  %p2016_p11 = scmp.ge.s32.totalorder %s2491_s27, 2 }
 0x390   : > { %s1688_s17 = sand.u32 1, %s2479_s24  }
 0x391   : > { %s1689_s18 = scalar_lea.sflag [#allocation4], %s1688_s17 }
 0x395   : > { %p2871_p2 = scmp.ne.s32.totalorder %s2870_s29, 0 }
 0x397   : > { %p2006_p1 = pnand %p2016_p11, %p2871_p2 }
 0x399   : > { %2474 = dma.done.wait (!%p2006_p1), %s1689_s18, 896  }
 0x39a   : > { %2476 = vsyncadd (!%p2006_p1), %s1689_s18, 4294966400  ;;  %p22_p4 = scmp.ge.s32.totalorder %s2673_s8, 6   ;;  %s2872_s24 = smov %s2483_s25 }
 0x39b   : > { %s2873_s25 = smov %s2487_s26  ;;  %s2874_s26 = smov %s2683_s19 }
 0x39c   : > { %s2875_s27 = smov %s2673_s8  ;;  %24 = sbr.rel (!%p22_p4) target bundleno = 7 (0x7), region = 105 }
 0x3a3   :  { %1694 = vsyncpa [#allocation3], 1 }
 0x3a4   :  { %1696 = vsyncpa [#allocation3 + $0x1], 1 }
 0x3a5   :  { %1697 = vsyncpa [#allocation6], 1 }
 0x3a6   :  { %1698 = vsyncpa [#allocation9], 1 }
 0x3a7   :  { %1699 = vsyncpa [#allocation4], 1 }
 0x3a8   :  { %1701 = vsyncpa [#allocation4 + $0x1], 1 }

</bundles_post_ra>
